<compile_context>
chip_gen: v6e
topology: v6e:2x2x1
jax: 0.10.0
libtpu: 0.0.40
codegen_flags: <defaults>
</compile_context>

<pallas_src>
import math

import jax
import jax.numpy as jnp
from jax.experimental import pallas as pl
from jax.experimental.pallas import tpu as pltpu


def _layer_norm(x, gamma, beta, eps=1e-5):
    mean = jnp.mean(x, axis=-1, keepdims=True)
    xc = x - mean
    var = jnp.mean(xc * xc, axis=-1, keepdims=True)
    return xc * jax.lax.rsqrt(var + eps) * gamma + beta


def _make_kernel(num_heads, head_dim, batch_block, seq_len):
    H, hd, Bb, S = num_heads, head_dim, batch_block, seq_len
    D = H * hd

    def mm(a_bf16, w_ref, b_ref):
        # bf16 MXU inputs, f32 accumulation, f32 bias add.
        return jnp.dot(a_bf16, w_ref[0], preferred_element_type=jnp.float32) + b_ref[0]

    def split_heads(t):
        # (Bb*S, D) -> (Bb*H, S, hd); leading batch dim ordered (b, h).
        # Mosaic only lowers transposes that swap the two minor dims, so the relayout is built
        # from per-batch 2-D transposes + a (supported) last-two-dims swap; no lane slicing.
        if Bb == 1:
            tt = t.T                                                   # (D, S), rows (h, d)
        else:
            tt = jnp.concatenate([t[b * S:(b + 1) * S, :].T for b in range(Bb)], axis=0)
        tt = tt.reshape(Bb * H, hd, S)                                 # (b*h, d, s)
        return jnp.swapaxes(tt, 1, 2)                                  # (b*h, s, d)

    def merge_heads(o):
        # (Bb*H, S, hd) -> (Bb*S, D); columns ordered (h, d) to match Wqkv / Wo layout.
        ot = jnp.swapaxes(o, 1, 2).reshape(Bb * D, S)                  # rows (b, h, d)
        if Bb == 1:
            return ot.T
        return jnp.concatenate([ot[b * D:(b + 1) * D, :].T for b in range(Bb)], axis=0)

    def kernel(x_ref, wqkv_ref, bqkv_ref, wo_ref, bo_ref, g1_ref, be1_ref,
               w1_ref, b1_ref, w2_ref, b2_ref, g2_ref, be2_ref, o_ref):
        # Activation carried across the layer grid axis inside the output block.
        @pl.when(pl.program_id(1) == 0)
        def _():
            o_ref[...] = x_ref[...]

        h = o_ref[...]                                                 # (Bb*S, D) f32

        # ---- fused QKV projection (softmax scale pre-folded into the Q columns) ----
        qkv = mm(h.astype(jnp.bfloat16), wqkv_ref, bqkv_ref)           # (Bb*S, 3D) f32
        qh = split_heads(qkv[:, 0 * D:1 * D].astype(jnp.bfloat16))
        kh = split_heads(qkv[:, 1 * D:2 * D].astype(jnp.bfloat16))
        vh = split_heads(qkv[:, 2 * D:3 * D].astype(jnp.bfloat16))

        # ---- exact attention, one batched einsum over all (batch, head) pairs ----
        s = jnp.einsum('nqd,nkd->nqk', qh, kh, preferred_element_type=jnp.float32)
        s = s - jnp.max(s, axis=-1, keepdims=True)
        p = jnp.exp(s)
        p = p * pl.reciprocal(jnp.sum(p, axis=-1, keepdims=True), approx=True)
        ctx = jnp.einsum('nqk,nkd->nqd', p.astype(jnp.bfloat16), vh,
                         preferred_element_type=jnp.float32)           # (Bb*H, S, hd) f32
        attn = merge_heads(ctx.astype(jnp.bfloat16))                   # (Bb*S, D) bf16

        # ---- output projection, residual + LayerNorm1 (post-norm, dropout = 0) ----
        attn = mm(attn, wo_ref, bo_ref)
        y = _layer_norm(attn + h, g1_ref[0], be1_ref[0])

        # ---- MLP: fc1 -> GELU (tanh approx) -> fc2, residual + LayerNorm2 ----
        m = mm(y.astype(jnp.bfloat16), w1_ref, b1_ref)
        m = jax.nn.gelu(m, approximate=True)
        m = mm(m.astype(jnp.bfloat16), w2_ref, b2_ref)
        o_ref[...] = _layer_norm(m + y, g2_ref[0], be2_ref[0])

    return kernel


def flash_transformer_encoder(x, params, num_heads, batch_block=None):
    """x: (B, S, D) float32.  params: dict of stacked per-layer weights (see init_params)."""
    B, S, D = x.shape
    assert D % num_heads == 0
    head_dim = D // num_heads
    num_layers = params["wqkv"].shape[0]
    Fff = params["w1"].shape[-1]

    # Rows per grid step: target ~512 so projection / MLP matmuls fill the MXU M dim, but keep
    # >= 2 batch-grid steps when possible (v7x has 2 TCs; the "parallel" axis shards them).
    if batch_block is None:
        batch_block = max(1, min(B, 512 // max(S, 1)))
        if B > 1 and pl.cdiv(B, batch_block) < 2:
            batch_block = pl.cdiv(B, 2)
    Bb = batch_block
    Bp = pl.cdiv(B, Bb) * Bb
    if Bp != B:  # pad batch; padded rows are self-contained and sliced off at the end
        x = jnp.concatenate([x, jnp.zeros((Bp - B, S, D), x.dtype)], axis=0)

    rows = Bb * S
    xf = x.reshape(Bp * S, D)          # fold (batch, seq) into the matmul M / sublane dim
    grid = (Bp // Bb, num_layers)      # layer axis last => iterated innermost (carry)

    kernel = _make_kernel(num_heads, head_dim, Bb, S)

    order = ("wqkv", "bqkv", "wo", "bo", "g1", "be1", "w1", "b1", "w2", "b2", "g2", "be2")

    def layer_spec(arr):  # one layer's slice of a stacked (L, a, b) param per grid step
        return pl.BlockSpec((1,) + arr.shape[1:], lambda i, l: (l, 0, 0))

    in_specs = [pl.BlockSpec((rows, D), lambda i, l: (i, 0))]
    in_specs += [layer_spec(params[k]) for k in order]
    out_specs = pl.BlockSpec((rows, D), lambda i, l: (i, 0))

    # Explicit VMEM budget: one layer's weights (double-buffered) + activations/intermediates,
    # with headroom; clamped well under v7x's 64 MiB physical for these shapes.
    weight_bytes = sum(math.prod(params[k].shape[1:]) * params[k].dtype.itemsize for k in order)
    act_bytes = rows * (2 * D + 3 * D + Fff) * 4 + Bb * num_heads * S * S * 4
    vmem_limit = int(min(112 * 2**20, max(24 * 2**20, 3 * (weight_bytes + act_bytes))))

    out = pl.pallas_call(
        kernel,
        out_shape=jax.ShapeDtypeStruct((Bp * S, D), jnp.float32),
        grid=grid,
        in_specs=in_specs,
        out_specs=out_specs,
        compiler_params=pltpu.CompilerParams(
            dimension_semantics=("parallel", "arbitrary"),
            vmem_limit_bytes=vmem_limit),
    )(xf, *[params[k] for k in order])

    return out.reshape(Bp, S, D)[:B]


def init_params(key, num_layers, D, num_heads, Fff):
    """PyTorch Linear computes y = x @ W.T + b, so weights are stored pre-transposed.  Wqkv is
    packed as (D, 3D) with output columns ordered [q | k | v] (heads contiguous inside each),
    matching flash_attn's '(three h d)' layout.  The 1/sqrt(head_dim) softmax scale is folded
    into the Q columns and Q bias.  Matmul weights are bf16 (MXU inputs); biases / LN stay f32."""
    hd = D // num_heads
    scale = 1.0 / math.sqrt(hd)
    wqkv_l, bqkv_l, wo_l, bo_l, w1_l, b1_l, w2_l, b2_l = ([] for _ in range(8))
    for _ in range(num_layers):
        key, *ks = jax.random.split(key, 9)
        wqkv = jax.random.normal(ks[0], (3 * D, D), jnp.float32) * 0.05
        bqkv = jax.random.normal(ks[1], (3 * D,), jnp.float32) * 0.05
        wo = jax.random.normal(ks[2], (D, D), jnp.float32) * 0.05
        bo = jax.random.normal(ks[3], (D,), jnp.float32) * 0.05
        w1 = jax.random.normal(ks[4], (Fff, D), jnp.float32) * 0.05
        b1 = jax.random.normal(ks[5], (Fff,), jnp.float32) * 0.05
        w2 = jax.random.normal(ks[6], (D, Fff), jnp.float32) * 0.05
        b2 = jax.random.normal(ks[7], (D,), jnp.float32) * 0.05
        wqkv_t = wqkv.T.at[:, :D].multiply(scale)          # fold softmax scale into Wq
        bqkv = bqkv.at[:D].multiply(scale)                 # ... and into bq
        wqkv_l.append(wqkv_t)
        bqkv_l.append(bqkv.reshape(1, 3 * D))
        wo_l.append(wo.T); bo_l.append(bo.reshape(1, D))
        w1_l.append(w1.T); b1_l.append(b1.reshape(1, Fff))
        w2_l.append(w2.T); b2_l.append(b2.reshape(1, D))
    return dict(
        wqkv=jnp.stack(wqkv_l).astype(jnp.bfloat16),
        bqkv=jnp.stack(bqkv_l),
        wo=jnp.stack(wo_l).astype(jnp.bfloat16),
        bo=jnp.stack(bo_l),
        g1=jnp.ones((num_layers, 1, D), jnp.float32),
        be1=jnp.zeros((num_layers, 1, D), jnp.float32),
        w1=jnp.stack(w1_l).astype(jnp.bfloat16),
        b1=jnp.stack(b1_l),
        w2=jnp.stack(w2_l).astype(jnp.bfloat16),
        b2=jnp.stack(b2_l),
        g2=jnp.ones((num_layers, 1, D), jnp.float32),
        be2=jnp.zeros((num_layers, 1, D), jnp.float32),
    )


if __name__ == "__main__":
    # Small shapes consistent with the module: dim_model=32, num_heads=4 (head_dim=8),
    # dim_feedforward=4*dim_model=128, num_layers=2, batch=2, seq=8.
    B, S, D = 2, 8, 32
    H, L = 4, 2
    Fff = 4 * D

    key = jax.random.PRNGKey(0)
    kx, kp = jax.random.split(key)
    x = jax.random.normal(kx, (B, S, D), jnp.float32)
    params = init_params(kp, L, D, H, Fff)

    out = flash_transformer_encoder(x, params, H)
    out = jax.block_until_ready(out)
    assert out.shape == (B, S, D) and out.dtype == jnp.float32
    assert bool(jnp.all(jnp.isfinite(out)))
    print("KERNEL_OK")
</pallas_src>

<mosaic_0001>
module attributes {stable_mosaic.version = 11 : i64} {
  func.func @kernel(%arg0: i32, %arg1: i32, %arg2: memref<8x32xf32, #tpu.memory_space<vmem>>, %arg3: memref<1x32x96xbf16, #tpu.memory_space<vmem>>, %arg4: memref<1x1x96xf32, #tpu.memory_space<vmem>>, %arg5: memref<1x32x32xbf16, #tpu.memory_space<vmem>>, %arg6: memref<1x1x32xf32, #tpu.memory_space<vmem>>, %arg7: memref<1x1x32xf32, #tpu.memory_space<vmem>>, %arg8: memref<1x1x32xf32, #tpu.memory_space<vmem>>, %arg9: memref<1x32x128xbf16, #tpu.memory_space<vmem>>, %arg10: memref<1x1x128xf32, #tpu.memory_space<vmem>>, %arg11: memref<1x128x32xbf16, #tpu.memory_space<vmem>>, %arg12: memref<1x1x32xf32, #tpu.memory_space<vmem>>, %arg13: memref<1x1x32xf32, #tpu.memory_space<vmem>>, %arg14: memref<1x1x32xf32, #tpu.memory_space<vmem>>, %arg15: memref<8x32xf32, #tpu.memory_space<vmem>>) attributes {dimension_semantics = [#tpu.dimension_semantics<parallel>, #tpu.dimension_semantics<arbitrary>], iteration_bounds = array<i64: 2, 2>, scalar_prefetch = 0 : i64, scratch_operands = 0 : i64, tpu.core_type = #tpu.core_type<tc>, window_params = [{transform_indices = @transform_0, window_bounds = array<i64: 8, 32>}, {transform_indices = @transform_1, window_bounds = array<i64: 1, 32, 96>}, {transform_indices = @transform_2, window_bounds = array<i64: 1, 1, 96>}, {transform_indices = @transform_3, window_bounds = array<i64: 1, 32, 32>}, {transform_indices = @transform_4, window_bounds = array<i64: 1, 1, 32>}, {transform_indices = @transform_5, window_bounds = array<i64: 1, 1, 32>}, {transform_indices = @transform_6, window_bounds = array<i64: 1, 1, 32>}, {transform_indices = @transform_7, window_bounds = array<i64: 1, 32, 128>}, {transform_indices = @transform_8, window_bounds = array<i64: 1, 1, 128>}, {transform_indices = @transform_9, window_bounds = array<i64: 1, 128, 32>}, {transform_indices = @transform_10, window_bounds = array<i64: 1, 1, 32>}, {transform_indices = @transform_11, window_bounds = array<i64: 1, 1, 32>}, {transform_indices = @transform_12, window_bounds = array<i64: 1, 1, 32>}, {transform_indices = @transform_13, window_bounds = array<i64: 8, 32>}]} {
    %c0_i32 = arith.constant 0 : i32
    %0 = arith.cmpi eq, %arg1, %c0_i32 : i32
    %1 = arith.extui %0 : i1 to i32
    %c0_i32_0 = arith.constant 0 : i32
    %2 = arith.cmpi ne, %1, %c0_i32_0 : i32
    scf.if %2 {
      %c0_61 = arith.constant 0 : index
      %c0_62 = arith.constant 0 : index
      %131 = vector.load %arg2[%c0_61, %c0_62] : memref<8x32xf32, #tpu.memory_space<vmem>>, vector<8x32xf32>
      %c0_63 = arith.constant 0 : index
      %c0_64 = arith.constant 0 : index
      %132 = vector.load %arg15[%c0_63, %c0_64] : memref<8x32xf32, #tpu.memory_space<vmem>>, vector<8x32xf32>
      tpu.vector_store %arg15[%c0_63, %c0_64], %131 {strides = array<i32>} : memref<8x32xf32, #tpu.memory_space<vmem>>, vector<8x32xf32>,
    } else {
    }
    %c0 = arith.constant 0 : index
    %c0_1 = arith.constant 0 : index
    %3 = vector.load %arg15[%c0, %c0_1] : memref<8x32xf32, #tpu.memory_space<vmem>>, vector<8x32xf32>
    %4 = arith.truncf %3 : vector<8x32xf32> to vector<8x32xbf16>
    %c0_2 = arith.constant 0 : index
    %c0_3 = arith.constant 0 : index
    %c0_4 = arith.constant 0 : index
    %5 = vector.load %arg3[%c0_2, %c0_3, %c0_4] : memref<1x32x96xbf16, #tpu.memory_space<vmem>>, vector<1x32x96xbf16>
    %6 = vector.shape_cast %5 : vector<1x32x96xbf16> to vector<32x96xbf16>
    %cst = arith.constant dense<0.000000e+00> : vector<8x96xf32>
    %7 = tpu.matmul %4, %6, %cst {dimension_numbers = #tpu.dot_dimension_numbers<[1], [0], [0], [1], [0, 0, 1, 1], [], []>} : vector<8x32xbf16>, vector<32x96xbf16>, vector<8x96xf32> -> vector<8x96xf32>
    %c0_5 = arith.constant 0 : index
    %c0_6 = arith.constant 0 : index
    %c0_7 = arith.constant 0 : index
    %8 = vector.load %arg4[%c0_5, %c0_6, %c0_7] : memref<1x1x96xf32, #tpu.memory_space<vmem>>, vector<1x1x96xf32>
    %9 = vector.shape_cast %8 : vector<1x1x96xf32> to vector<1x96xf32>
    %10 = vector.broadcast %9 : vector<1x96xf32> to vector<8x96xf32>
    %11 = arith.addf %7, %10 : vector<8x96xf32>
    %12 = vector.extract_strided_slice %11 {offsets = [0, 0], sizes = [8, 32], strides = [1, 1]} : vector<8x96xf32> to vector<8x32xf32>
    %13 = arith.truncf %12 : vector<8x32xf32> to vector<8x32xbf16>
    %14 = tpu.transpose %13, [1, 0] : vector<8x32xbf16> -> vector<32x8xbf16>
    %15 = vector.shape_cast %14 : vector<32x8xbf16> to vector<4x8x8xbf16>
    %16 = tpu.transpose %15, [0, 2, 1] : vector<4x8x8xbf16> -> vector<4x8x8xbf16>
    %17 = vector.extract_strided_slice %11 {offsets = [0, 32], sizes = [8, 32], strides = [1, 1]} : vector<8x96xf32> to vector<8x32xf32>
    %18 = arith.truncf %17 : vector<8x32xf32> to vector<8x32xbf16>
    %19 = tpu.transpose %18, [1, 0] : vector<8x32xbf16> -> vector<32x8xbf16>
    %20 = vector.shape_cast %19 : vector<32x8xbf16> to vector<4x8x8xbf16>
    %21 = tpu.transpose %20, [0, 2, 1] : vector<4x8x8xbf16> -> vector<4x8x8xbf16>
    %22 = vector.extract_strided_slice %11 {offsets = [0, 64], sizes = [8, 32], strides = [1, 1]} : vector<8x96xf32> to vector<8x32xf32>
    %23 = arith.truncf %22 : vector<8x32xf32> to vector<8x32xbf16>
    %24 = tpu.transpose %23, [1, 0] : vector<8x32xbf16> -> vector<32x8xbf16>
    %25 = vector.shape_cast %24 : vector<32x8xbf16> to vector<4x8x8xbf16>
    %26 = tpu.transpose %25, [0, 2, 1] : vector<4x8x8xbf16> -> vector<4x8x8xbf16>
    "tpu.trace_start"() <{level = 10 : i32, message = "nqd,nkd->nqk"}> : () -> ()
    %cst_8 = arith.constant dense<0.000000e+00> : vector<4x8x8xf32>
    %27 = tpu.matmul %16, %21, %cst_8 {dimension_numbers = #tpu.dot_dimension_numbers<[2], [2], [1], [1], [0, 0, 0, 1, 1, 1], [0], [0]>} : vector<4x8x8xbf16>, vector<4x8x8xbf16>, vector<4x8x8xf32> -> vector<4x8x8xf32>
    "tpu.trace_stop"() : () -> ()
    %cst_9 = arith.constant dense<0xFF800000> : vector<4x8xf32>
    %28 = vector.multi_reduction <maximumf>, %27, %cst_9 [2] : vector<4x8x8xf32> to vector<4x8xf32>
    %29 = vector.shape_cast %28 : vector<4x8xf32> to vector<4x8x1xf32>
    %30 = vector.broadcast %29 : vector<4x8x1xf32> to vector<4x8x8xf32>
    %31 = arith.subf %27, %30 : vector<4x8x8xf32>
    %32 = math.exp %31 : vector<4x8x8xf32>
    %cst_10 = arith.constant dense<0.000000e+00> : vector<4x8xf32>
    %33 = vector.multi_reduction <add>, %32, %cst_10 [2] : vector<4x8x8xf32> to vector<4x8xf32>
    %34 = vector.shape_cast %33 : vector<4x8xf32> to vector<4x8x1xf32>
    %35 = tpu.reciprocal %34 {approx = true} : vector<4x8x1xf32> -> vector<4x8x1xf32>
    %36 = vector.broadcast %35 : vector<4x8x1xf32> to vector<4x8x8xf32>
    %37 = arith.mulf %32, %36 : vector<4x8x8xf32>
    %38 = arith.truncf %37 : vector<4x8x8xf32> to vector<4x8x8xbf16>
    "tpu.trace_start"() <{level = 10 : i32, message = "nqk,nkd->nqd"}> : () -> ()
    %cst_11 = arith.constant dense<0.000000e+00> : vector<4x8x8xf32>
    %39 = tpu.matmul %38, %26, %cst_11 {dimension_numbers = #tpu.dot_dimension_numbers<[2], [1], [1], [2], [0, 0, 0, 1, 1, 2], [0], [0]>} : vector<4x8x8xbf16>, vector<4x8x8xbf16>, vector<4x8x8xf32> -> vector<4x8x8xf32>
    "tpu.trace_stop"() : () -> ()
    %40 = arith.truncf %39 : vector<4x8x8xf32> to vector<4x8x8xbf16>
    %41 = tpu.transpose %40, [0, 2, 1] : vector<4x8x8xbf16> -> vector<4x8x8xbf16>
    %42 = vector.shape_cast %41 : vector<4x8x8xbf16> to vector<32x8xbf16>
    %43 = tpu.transpose %42, [1, 0] : vector<32x8xbf16> -> vector<8x32xbf16>
    %c0_12 = arith.constant 0 : index
    %c0_13 = arith.constant 0 : index
    %c0_14 = arith.constant 0 : index
    %44 = vector.load %arg5[%c0_12, %c0_13, %c0_14] : memref<1x32x32xbf16, #tpu.memory_space<vmem>>, vector<1x32x32xbf16>
    %45 = vector.shape_cast %44 : vector<1x32x32xbf16> to vector<32x32xbf16>
    %cst_15 = arith.constant dense<0.000000e+00> : vector<8x32xf32>
    %46 = tpu.matmul %43, %45, %cst_15 {dimension_numbers = #tpu.dot_dimension_numbers<[1], [0], [0], [1], [0, 0, 1, 1], [], []>} : vector<8x32xbf16>, vector<32x32xbf16>, vector<8x32xf32> -> vector<8x32xf32>
    %c0_16 = arith.constant 0 : index
    %c0_17 = arith.constant 0 : index
    %c0_18 = arith.constant 0 : index
    %47 = vector.load %arg6[%c0_16, %c0_17, %c0_18] : memref<1x1x32xf32, #tpu.memory_space<vmem>>, vector<1x1x32xf32>
    %48 = vector.shape_cast %47 : vector<1x1x32xf32> to vector<1x32xf32>
    %49 = vector.broadcast %48 : vector<1x32xf32> to vector<8x32xf32>
    %50 = arith.addf %46, %49 : vector<8x32xf32>
    %51 = arith.addf %50, %3 : vector<8x32xf32>
    %c0_19 = arith.constant 0 : index
    %c0_20 = arith.constant 0 : index
    %c0_21 = arith.constant 0 : index
    %52 = vector.load %arg7[%c0_19, %c0_20, %c0_21] : memref<1x1x32xf32, #tpu.memory_space<vmem>>, vector<1x1x32xf32>
    %53 = vector.shape_cast %52 : vector<1x1x32xf32> to vector<1x32xf32>
    %c0_22 = arith.constant 0 : index
    %c0_23 = arith.constant 0 : index
    %c0_24 = arith.constant 0 : index
    %54 = vector.load %arg8[%c0_22, %c0_23, %c0_24] : memref<1x1x32xf32, #tpu.memory_space<vmem>>, vector<1x1x32xf32>
    %55 = vector.shape_cast %54 : vector<1x1x32xf32> to vector<1x32xf32>
    %cst_25 = arith.constant dense<0.000000e+00> : vector<8xf32>
    %56 = vector.multi_reduction <add>, %51, %cst_25 [1] : vector<8x32xf32> to vector<8xf32>
    %57 = vector.shape_cast %56 : vector<8xf32> to vector<8x1xf32>
    %cst_26 = arith.constant 3.200000e+01 : f32
    %58 = vector.broadcast %cst_26 : f32 to vector<8x1xf32>
    %59 = arith.divf %57, %58 : vector<8x1xf32>
    %60 = vector.broadcast %59 : vector<8x1xf32> to vector<8x32xf32>
    %61 = arith.subf %51, %60 : vector<8x32xf32>
    %62 = arith.mulf %61, %61 : vector<8x32xf32>
    %cst_27 = arith.constant dense<0.000000e+00> : vector<8xf32>
    %63 = vector.multi_reduction <add>, %62, %cst_27 [1] : vector<8x32xf32> to vector<8xf32>
    %64 = vector.shape_cast %63 : vector<8xf32> to vector<8x1xf32>
    %cst_28 = arith.constant 3.200000e+01 : f32
    %65 = vector.broadcast %cst_28 : f32 to vector<8x1xf32>
    %66 = arith.divf %64, %65 : vector<8x1xf32>
    %cst_29 = arith.constant 9.99999974E-6 : f32
    %67 = vector.broadcast %cst_29 : f32 to vector<8x1xf32>
    %68 = arith.addf %66, %67 : vector<8x1xf32>
    %69 = math.rsqrt %68 : vector<8x1xf32>
    %70 = vector.broadcast %69 : vector<8x1xf32> to vector<8x32xf32>
    %71 = arith.mulf %61, %70 : vector<8x32xf32>
    %72 = vector.broadcast %53 : vector<1x32xf32> to vector<8x32xf32>
    %73 = arith.mulf %71, %72 : vector<8x32xf32>
    %74 = vector.broadcast %55 : vector<1x32xf32> to vector<8x32xf32>
    %75 = arith.addf %73, %74 : vector<8x32xf32>
    %76 = arith.truncf %75 : vector<8x32xf32> to vector<8x32xbf16>
    %c0_30 = arith.constant 0 : index
    %c0_31 = arith.constant 0 : index
    %c0_32 = arith.constant 0 : index
    %77 = vector.load %arg9[%c0_30, %c0_31, %c0_32] : memref<1x32x128xbf16, #tpu.memory_space<vmem>>, vector<1x32x128xbf16>
    %78 = vector.shape_cast %77 : vector<1x32x128xbf16> to vector<32x128xbf16>
    %cst_33 = arith.constant dense<0.000000e+00> : vector<8x128xf32>
    %79 = tpu.matmul %76, %78, %cst_33 {dimension_numbers = #tpu.dot_dimension_numbers<[1], [0], [0], [1], [0, 0, 1, 1], [], []>} : vector<8x32xbf16>, vector<32x128xbf16>, vector<8x128xf32> -> vector<8x128xf32>
    %c0_34 = arith.constant 0 : index
    %c0_35 = arith.constant 0 : index
    %c0_36 = arith.constant 0 : index
    %80 = vector.load %arg10[%c0_34, %c0_35, %c0_36] : memref<1x1x128xf32, #tpu.memory_space<vmem>>, vector<1x1x128xf32>
    %81 = vector.shape_cast %80 : vector<1x1x128xf32> to vector<1x128xf32>
    %82 = vector.broadcast %81 : vector<1x128xf32> to vector<8x128xf32>
    %83 = arith.addf %79, %82 : vector<8x128xf32>
    %84 = arith.mulf %83, %83 : vector<8x128xf32>
    %85 = arith.mulf %83, %84 : vector<8x128xf32>
    %cst_37 = arith.constant 4.471500e-02 : f32
    %86 = vector.broadcast %cst_37 : f32 to vector<8x128xf32>
    %87 = arith.mulf %86, %85 : vector<8x128xf32>
    %88 = arith.addf %83, %87 : vector<8x128xf32>
    %cst_38 = arith.constant 0.797884583 : f32
    %89 = vector.broadcast %cst_38 : f32 to vector<8x128xf32>
    %90 = arith.mulf %89, %88 : vector<8x128xf32>
    %91 = math.tanh %90 : vector<8x128xf32>
    %cst_39 = arith.constant 1.000000e+00 : f32
    %92 = vector.broadcast %cst_39 : f32 to vector<8x128xf32>
    %93 = arith.addf %92, %91 : vector<8x128xf32>
    %cst_40 = arith.constant 5.000000e-01 : f32
    %94 = vector.broadcast %cst_40 : f32 to vector<8x128xf32>
    %95 = arith.mulf %94, %93 : vector<8x128xf32>
    %96 = arith.mulf %83, %95 : vector<8x128xf32>
    %97 = arith.truncf %96 : vector<8x128xf32> to vector<8x128xbf16>
    %c0_41 = arith.constant 0 : index
    %c0_42 = arith.constant 0 : index
    %c0_43 = arith.constant 0 : index
    %98 = vector.load %arg11[%c0_41, %c0_42, %c0_43] : memref<1x128x32xbf16, #tpu.memory_space<vmem>>, vector<1x128x32xbf16>
    %99 = vector.shape_cast %98 : vector<1x128x32xbf16> to vector<128x32xbf16>
    %cst_44 = arith.constant dense<0.000000e+00> : vector<8x32xf32>
    %100 = tpu.matmul %97, %99, %cst_44 {dimension_numbers = #tpu.dot_dimension_numbers<[1], [0], [0], [1], [0, 0, 1, 1], [], []>} : vector<8x128xbf16>, vector<128x32xbf16>, vector<8x32xf32> -> vector<8x32xf32>
    %c0_45 = arith.constant 0 : index
    %c0_46 = arith.constant 0 : index
    %c0_47 = arith.constant 0 : index
    %101 = vector.load %arg12[%c0_45, %c0_46, %c0_47] : memref<1x1x32xf32, #tpu.memory_space<vmem>>, vector<1x1x32xf32>
    %102 = vector.shape_cast %101 : vector<1x1x32xf32> to vector<1x32xf32>
    %103 = vector.broadcast %102 : vector<1x32xf32> to vector<8x32xf32>
    %104 = arith.addf %100, %103 : vector<8x32xf32>
    %105 = arith.addf %104, %75 : vector<8x32xf32>
    %c0_48 = arith.constant 0 : index
    %c0_49 = arith.constant 0 : index
    %c0_50 = arith.constant 0 : index
    %106 = vector.load %arg13[%c0_48, %c0_49, %c0_50] : memref<1x1x32xf32, #tpu.memory_space<vmem>>, vector<1x1x32xf32>
    %107 = vector.shape_cast %106 : vector<1x1x32xf32> to vector<1x32xf32>
    %c0_51 = arith.constant 0 : index
    %c0_52 = arith.constant 0 : index
    %c0_53 = arith.constant 0 : index
    %108 = vector.load %arg14[%c0_51, %c0_52, %c0_53] : memref<1x1x32xf32, #tpu.memory_space<vmem>>, vector<1x1x32xf32>
    %109 = vector.shape_cast %108 : vector<1x1x32xf32> to vector<1x32xf32>
    %cst_54 = arith.constant dense<0.000000e+00> : vector<8xf32>
    %110 = vector.multi_reduction <add>, %105, %cst_54 [1] : vector<8x32xf32> to vector<8xf32>
    %111 = vector.shape_cast %110 : vector<8xf32> to vector<8x1xf32>
    %cst_55 = arith.constant 3.200000e+01 : f32
    %112 = vector.broadcast %cst_55 : f32 to vector<8x1xf32>
    %113 = arith.divf %111, %112 : vector<8x1xf32>
    %114 = vector.broadcast %113 : vector<8x1xf32> to vector<8x32xf32>
    %115 = arith.subf %105, %114 : vector<8x32xf32>
    %116 = arith.mulf %115, %115 : vector<8x32xf32>
    %cst_56 = arith.constant dense<0.000000e+00> : vector<8xf32>
    %117 = vector.multi_reduction <add>, %116, %cst_56 [1] : vector<8x32xf32> to vector<8xf32>
    %118 = vector.shape_cast %117 : vector<8xf32> to vector<8x1xf32>
    %cst_57 = arith.constant 3.200000e+01 : f32
    %119 = vector.broadcast %cst_57 : f32 to vector<8x1xf32>
    %120 = arith.divf %118, %119 : vector<8x1xf32>
    %cst_58 = arith.constant 9.99999974E-6 : f32
    %121 = vector.broadcast %cst_58 : f32 to vector<8x1xf32>
    %122 = arith.addf %120, %121 : vector<8x1xf32>
    %123 = math.rsqrt %122 : vector<8x1xf32>
    %124 = vector.broadcast %123 : vector<8x1xf32> to vector<8x32xf32>
    %125 = arith.mulf %115, %124 : vector<8x32xf32>
    %126 = vector.broadcast %107 : vector<1x32xf32> to vector<8x32xf32>
    %127 = arith.mulf %125, %126 : vector<8x32xf32>
    %128 = vector.broadcast %109 : vector<1x32xf32> to vector<8x32xf32>
    %129 = arith.addf %127, %128 : vector<8x32xf32>
    %c0_59 = arith.constant 0 : index
    %c0_60 = arith.constant 0 : index
    %130 = vector.load %arg15[%c0_59, %c0_60] : memref<8x32xf32, #tpu.memory_space<vmem>>, vector<8x32xf32>
    tpu.vector_store %arg15[%c0_59, %c0_60], %129 {strides = array<i32>} : memref<8x32xf32, #tpu.memory_space<vmem>>, vector<8x32xf32>,
    return
  }
  func.func @transform_0(%arg0: i32, %arg1: i32) -> (i32, i32) {
    %c0_i32 = arith.constant 0 : i32
    %c0_i32_0 = arith.constant 0 : i32
    return %arg0, %c0_i32 : i32, i32
  }
  func.func @transform_1(%arg0: i32, %arg1: i32) -> (i32, i32, i32) {
    %c0_i32 = arith.constant 0 : i32
    %c0_i32_0 = arith.constant 0 : i32
    %c0_i32_1 = arith.constant 0 : i32
    return %arg1, %c0_i32, %c0_i32_0 : i32, i32, i32
  }
  func.func @transform_2(%arg0: i32, %arg1: i32) -> (i32, i32, i32) {
    %c0_i32 = arith.constant 0 : i32
    %c0_i32_0 = arith.constant 0 : i32
    %c0_i32_1 = arith.constant 0 : i32
    return %arg1, %c0_i32, %c0_i32_0 : i32, i32, i32
  }
  func.func @transform_3(%arg0: i32, %arg1: i32) -> (i32, i32, i32) {
    %c0_i32 = arith.constant 0 : i32
    %c0_i32_0 = arith.constant 0 : i32
    %c0_i32_1 = arith.constant 0 : i32
    return %arg1, %c0_i32, %c0_i32_0 : i32, i32, i32
  }
  func.func @transform_4(%arg0: i32, %arg1: i32) -> (i32, i32, i32) {
    %c0_i32 = arith.constant 0 : i32
    %c0_i32_0 = arith.constant 0 : i32
    %c0_i32_1 = arith.constant 0 : i32
    return %arg1, %c0_i32, %c0_i32_0 : i32, i32, i32
  }
  func.func @transform_5(%arg0: i32, %arg1: i32) -> (i32, i32, i32) {
    %c0_i32 = arith.constant 0 : i32
    %c0_i32_0 = arith.constant 0 : i32
    %c0_i32_1 = arith.constant 0 : i32
    return %arg1, %c0_i32, %c0_i32_0 : i32, i32, i32
  }
  func.func @transform_6(%arg0: i32, %arg1: i32) -> (i32, i32, i32) {
    %c0_i32 = arith.constant 0 : i32
    %c0_i32_0 = arith.constant 0 : i32
    %c0_i32_1 = arith.constant 0 : i32
    return %arg1, %c0_i32, %c0_i32_0 : i32, i32, i32
  }
  func.func @transform_7(%arg0: i32, %arg1: i32) -> (i32, i32, i32) {
    %c0_i32 = arith.constant 0 : i32
    %c0_i32_0 = arith.constant 0 : i32
    %c0_i32_1 = arith.constant 0 : i32
    return %arg1, %c0_i32, %c0_i32_0 : i32, i32, i32
  }
  func.func @transform_8(%arg0: i32, %arg1: i32) -> (i32, i32, i32) {
    %c0_i32 = arith.constant 0 : i32
    %c0_i32_0 = arith.constant 0 : i32
    %c0_i32_1 = arith.constant 0 : i32
    return %arg1, %c0_i32, %c0_i32_0 : i32, i32, i32
  }
  func.func @transform_9(%arg0: i32, %arg1: i32) -> (i32, i32, i32) {
    %c0_i32 = arith.constant 0 : i32
    %c0_i32_0 = arith.constant 0 : i32
    %c0_i32_1 = arith.constant 0 : i32
    return %arg1, %c0_i32, %c0_i32_0 : i32, i32, i32
  }
  func.func @transform_10(%arg0: i32, %arg1: i32) -> (i32, i32, i32) {
    %c0_i32 = arith.constant 0 : i32
    %c0_i32_0 = arith.constant 0 : i32
    %c0_i32_1 = arith.constant 0 : i32
    return %arg1, %c0_i32, %c0_i32_0 : i32, i32, i32
  }
  func.func @transform_11(%arg0: i32, %arg1: i32) -> (i32, i32, i32) {
    %c0_i32 = arith.constant 0 : i32
    %c0_i32_0 = arith.constant 0 : i32
    %c0_i32_1 = arith.constant 0 : i32
    return %arg1, %c0_i32, %c0_i32_0 : i32, i32, i32
  }
  func.func @transform_12(%arg0: i32, %arg1: i32) -> (i32, i32, i32) {
    %c0_i32 = arith.constant 0 : i32
    %c0_i32_0 = arith.constant 0 : i32
    %c0_i32_1 = arith.constant 0 : i32
    return %arg1, %c0_i32, %c0_i32_0 : i32, i32, i32
  }
  func.func @transform_13(%arg0: i32, %arg1: i32) -> (i32, i32) {
    %c0_i32 = arith.constant 0 : i32
    %c0_i32_0 = arith.constant 0 : i32
    return %arg0, %c0_i32 : i32, i32
  }
}

</mosaic_0001>

<bundles_post_ra>
// kernel: tpu_custom_call.1
= control target key start
LH: loop header
LB: loop body
LE: loop exit
PB: predicated region body
PF: predicated region fallthrough
CT: control target
= control target key end

     0   :  { %s2709_s0 = inlined_call_operand.vmem [shape: f32[16,32], index: 0, kind: input, shape index: {}]   ;;  %s2710_s1 = inlined_call_operand.vmem [shape: bf16[2,32,96], index: 1, kind: input, shape index: {}]   ;;  %s2711_s2 = inlined_call_operand.vmem [shape: f32[2,1,96], index: 2, kind: input, shape index: {}]   ;;  %s2712_s3 = inlined_call_operand.vmem [shape: bf16[2,32,32], index: 3, kind: input, shape index: {}]   ;;  %s2713_s4 = inlined_call_operand.vmem [shape: f32[2,1,32], index: 4, kind: input, shape index: {}]   ;;  %s2714_s5 = inlined_call_operand.vmem [shape: f32[2,1,32], index: 5, kind: input, shape index: {}]   ;;  %s2715_s6 = inlined_call_operand.vmem [shape: f32[2,1,32], index: 6, kind: input, shape index: {}]   ;;  %s2716_s7 = inlined_call_operand.vmem [shape: bf16[2,32,128], index: 7, kind: input, shape index: {}]   ;;  %s2717_s8 = inlined_call_operand.vmem [shape: f32[2,1,128], index: 8, kind: input, shape index: {}]   ;;  %s2718_s9 = inlined_call_operand.vmem [shape: bf16[2,128,32], index: 9, kind: input, shape index: {}]   ;;  %s2719_s10 = inlined_call_operand.vmem [shape: f32[2,1,32], index: 10, kind: input, shape index: {}]   ;;  %s2720_s11 = inlined_call_operand.vmem [shape: f32[2,1,32], index: 11, kind: input, shape index: {}]   ;;  %s2721_s12 = inlined_call_operand.vmem [shape: f32[2,1,32], index: 12, kind: input, shape index: {}]   ;;  %s2722_s13 = inlined_call_operand.hbm [shape: f32[16,32], index: 13, kind: output, shape index: {}]  }
   0x1   :  { %2738 = sst [smem:[#allocation18_spill]] %s2709_s0 }
   0x2   :  { %2739 = sst [smem:[#allocation19_spill]] %s2710_s1 }
   0x3   :  { %2740 = sst [smem:[#allocation20_spill]] %s2712_s3 }
   0x4   :  { %2741 = sst [smem:[#allocation21_spill]] %s2716_s7 }
   0x5   :  { %2742 = sst [smem:[#allocation22_spill]] %s2721_s12 }
   0x6   :  { %2743 = sst [smem:[#allocation23_spill]] %s2722_s13 }
   0x7   :  { %18 = vsyncpa [#allocation3], 0 }
   0x8   :  { %20 = vsyncpa [#allocation3 + $0x1], 0  ;;  %s2383_s25 = smov 0   ;;  %s2385_s26 = smov 0  }
   0x9   :  { %s2387_s27 = smov 0   ;;  %s2389_s28 = smov 0  }
   0xa   :  { %s2391_s29 = smov 0   ;;  %s2393_s30 = smov 0  }
   0xb   :  { %s2395_s14 = smov 0   ;;  %s2397_s15 = smov 0  }
   0xc LB: > { %2744 = sst [smem:[#allocation5_spill]] %s2278_s25  ;;  %s1905_s16 = sadd.s32 4294967295, %s2306_s15   ;;  %s2306_s15 = sphi %s2397_s15, %s26_s15   ;;  %s2302_s14 = sphi %s2395_s14, %s2785_s14   ;;  %s2298_s30 = sphi %s2393_s30, %s2784_s30   ;;  %s2294_s29 = sphi %s2391_s29, %s2783_s29   ;;  %s2290_s28 = sphi %s2389_s28, %s2782_s28   ;;  %s2286_s27 = sphi %s2387_s27, %s2781_s27   ;;  %s2282_s26 = sphi %s2385_s26, %s2780_s26   ;;  %s2278_s25 = sphi %s2383_s25, %s2779_s25  }
   0xd   : > { %2745 = sst [smem:[#allocation6_spill]] %s2282_s26  ;;  %s1906_s17 = sadd.s32 4294967294, %s2306_s15  }
   0xe   : > { %2746 = sst [smem:[#allocation7_spill]] %s2286_s27  ;;  %s35_s18 = sadd.s32 1, %s2298_s30 }
   0xf   : > { %2747 = sst [smem:[#allocation8_spill]] %s2290_s28  ;;  %p36_p0 = scmp.ge.s32.totalorder %s35_s18, 2 }
  0x10   : > { %2748 = sst [smem:[#allocation9_spill]] %s2294_s29  ;;  %s38_s19 = sadd.s32 1, %s2302_s14 }
  0x11   : > { %2749 = sst [smem:[#allocation10_spill]] %s2298_s30  ;;  %p393_p1 = scmp.ne.s32.totalorder %s2286_s27, %s2282_s26 }
  0x12   : > { %2750 = sst [smem:[#allocation11_spill]] %s2302_s14  ;;  %p394_p2 = scmp.eq.s32.totalorder %s1905_s16, 3 }
  0x13   : > { %2751 = sst [smem:[#allocation12_spill]] %s2306_s15  ;;  %s2787_s18 = smov (%p36_p0, %s35_s18), 0 }
  0x14   : > { %2752 = sst [smem:[#allocation13_spill]] %s2787_s18  ;;  %s2789_s19 = smov (!%p36_p0, %s38_s19), %s2302_s14 }
  0x15   : > { %p2432_p3 = por %p394_p2, %p393_p1  ;;  %p399_p4 = scmp.ne.s32.totalorder %s2282_s26, %s2278_s25 }
  0x16   : > { %p40_p5 = scmp.ge.s32.totalorder %s2789_s19, 2  ;;  %p400_p6 = scmp.eq.s32.totalorder %s1906_s17, 3 }
  0x17   : > { %s2753_s20 = scalar_select %p2432_p3, 1, 0 }
  0x18   : > { %p1909_p7 = scmp.ge.s32.totalorder %s2306_s15, 1  ;;  %p505_p8 = scmp.lt.s32.totalorder %s2306_s15, 5 }
  0x19   : > { %2754 = sst [smem:[#allocation14_spill]] %s2753_s20  ;;  %s2791_s19 = smov (%p40_p5, %s2789_s19), 0 }
  0x1a   : > { %2755 = sst [smem:[#allocation15_spill]] %s2791_s19  ;;  %p2442_p9 = por %p400_p6, %p399_p4 }
  0x1b   : > { %p506_p10 = pnand %p1909_p7, %p505_p8  ;;  %s380_s22 = ssub.s32 %s2302_s14, %s2791_s19 }
  0x1c   : > { %s2756_s21 = scalar_select %p2442_p9, 1, 0 }
  0x1d   : > { %s383_s23 = sadd.s32 1, %s2286_s27  ;;  %p381_p11 = scmp.eq.s32.totalorder %s380_s22, 0 }
  0x1e   : > { %2757 = sst [smem:[#allocation16_spill]] %s2756_s21  ;;  %509 = sbr.rel (%p506_p10) target bundleno = 2665 (0xa69), region = 72 }
  0x1f   : > { %s2450_s24 = scalar_select %p381_p11, %s2286_s27, %s383_s23  }
  0x20   : > { %s2726_s16 = sand.u32 (!%p506_p10), 1, %s2282_s26   ;;  %p592_p12 = scmp.lt.s32.totalorder (!%p506_p10), %s2294_s29, 1 }
  0x21   : > { %2758 = sst [smem:[#allocation17_spill]] %s2450_s24  ;;  %s1910_s17 = sshll.u32 (!%p506_p10), %s2726_s16, 3 }
  0x22   : > { %p596_p13 = scmp.lt.s32.totalorder (!%p506_p10), %s2290_s28, 1  ;;  %s2759_s0 = sld [smem:[#allocation18_spill]] (!%p506_p10) }
  0x23   : > { %s593_s18 = scalar_select %p592_p12, %s2294_s29, 1 }
  0x24   : > { %s2459_s30 = scalar_select %p596_p13, %s2290_s28, 1 }
  0x25   : > { %s1911_s22 = sshll.u32 %s593_s18, 3  ;;  %s2760_s1 = sld [smem:[#allocation19_spill]] }
  0x26   : > { %s1972_s16 = sshll.u32 %s2459_s30, 4  ;;  %s2761_s3 = sld [smem:[#allocation20_spill]] }
  0x27   : > { %s2762_s7 = sld [smem:[#allocation21_spill]]  ;;  %s625_s13 = scalar_lea.vmem %s2717_s8, %s2459_s30 }
  0x28   : > { %s595_s14 = scalar_lea.vmem %s2759_s0, %s1911_s22  ;;  %s633_s12 = scalar_lea.vmem %s2719_s10, %s2459_s30 }
  0x29   : > { %s2763_s24 = sld [smem:[#allocation22_spill]]  ;;  %s2516_s26 = scalar_lea.vmem [#allocation2], %s1910_s17 }
  0x2a   : > { %s2764_s20 = sld [smem:[#allocation8_spill]] }
  0x2b   : > { %s600_s21 = scalar_lea.vmem %s2760_s1, %s1972_s16  ;;  %s636_s1 = scalar_lea.vmem %s2720_s11, %s2459_s30 }
  0x2c   : > { %s2475_s29 = scalar_lea.vmem %s2761_s3, %s1972_s16  ;;  %s1975_s3 = sshll.u32 %s2459_s30, 6 }
  0x2d   : > { %s2492_s15 = scalar_lea.vmem %s2762_s7, %s1972_s16  ;;  %s2506_s23 = scalar_lea.vmem %s2718_s9, %s1975_s3 }
  0x2f   : > { %s639_s7 = scalar_lea.vmem %s2763_s24, %s2459_s30 }
  0x30   : > { %p1920_p0 = scmp.ne.s32.totalorder %s2764_s20, 0 }
  0x32   : > { %644 = sbr.rel (%p1920_p0) target bundleno = 57 (0x39), region = 76 }
  0x37   : > { %v645_v0 = vld [vmem:[%s595_s14] sm:$0xff]  ;;  %vm646_vm0 = vcmask 261120  }
  0x38   : > { %647 = vst.msk [vmem:[%s2516_s26] sm:$0xff] %vm646_vm0, %v645_v0 }
  0x39 PF: > { %v2178_v1 = vld [vmem:[%s600_s21 + $0x8] sm:$0xff]   ;;  %v2308_v2 = vmov 0.0   ;;  %v2179_v3 = vld [vmem:[%s600_s21] sm:$0xff]   ;;  %vm2309_vm1 = vmmov 0   ;;  %vm673_vm2 = vcmask 261120   ;;  %s2765_s21 = scalar_lea.vmem %s2711_s2, %s2459_s30  ;;  %s2310_s17 = smov 96  }
  0x3a   : > { %2010 = vmatprep.subr.bf16.mxu1 %v2308_v2  ;;  %2030 = vmatprep.subr.bf16.mxu0 %v2308_v2  ;;  %v1921_v6 = vld [vmem:[%s2765_s21] ss:$0 sm:$0xff]  ;;  %vm875_vm3 = vcmask 1043456   ;;  %vm871_vm4 = vcmask 64512   ;;  %s2311_s24 = smov 64   ;;  %s2766_s18 = scalar_lea.vmem %s2713_s4, %s2459_s30 }
  0x3b   : > { %2011 = vmatpush3.bf16.msra.mxu1 %v2178_v1  ;;  %2014 = vmatprep.mubr.msk.bf16.mxu1 %vm2309_vm1, %v2308_v2  ;;  %s2767_s0 = scalar_lea.vmem %s2714_s5, %s2459_s30  ;;  %s2769_s3 = sld [smem:[#allocation9_spill]] }
  0x3c   : > { %2012 = vmatprep.subr.bf16.mxu1 %v2308_v2  ;;  %2032 = vmatprep.mubr.msk.bf16.mxu0 %vm2309_vm1, %v2308_v2  ;;  %s1715_s19 = sshll.u32 %s2516_s26, 4  ;;  %s2773_s27 = sld [smem:[#allocation23_spill]]  ;;  %s1716_s19 = int_to_ptr.vmem [resolvable:$true] %s1715_s19 }
  0x3f   : > { %v2525_v4 = vld [vmem:[%s2516_s26] sm:$0xff]  ;;  %2013 = vmatpush3.bf16.msra.mxu1 %v2179_v3 }
  0x40   : > { %v649_v5 = vpack.c.bf16 %v2525_v4, %v2525_v4  ;;  %2018 = vmatprep.subr.bf16.mxu1 %v2308_v2 }
  0x42   : > { %2015 = vmatmul.mubr.msk.bf16.vlgmr.msra.gmra.mxu1 %vm673_vm2, %v649_v5  ;;  %s2774_s16 = smov %s2773_s27 }
  0x43   : > { %2020 = vmatprep.mubr.msk.bf16.mxu1 %vm2309_vm1, %v2308_v2 }
 0x102   : > { %v711_v7 = vpop.f32.mrf.mxu1 }
 0x103   : > { %v712_v8 = vadd.f32 %v1921_v6, %v711_v7 }
 0x104   : > { %v2016_v9 = vpop.f32.mrf.mxu1 }
 0x105   : > { %v2541_v10 = vpack.c.bf16 %v712_v8, %v712_v8 }
 0x106   : > { %v714_v11 = vpop.f32.mrf.mxu1 }
 0x107   : > { %813 = vrot.lane.b32.xlu0 %v2541_v10, %s2310_s17 }
 0x108   : > { %v2017_v12 = vpop.f32.mrf.mxu1 }
 0x125   : > { %718 = vxpose.xlu0.c.b16.start.end [1/1] (short) (narrow) %v2541_v10, 32 }
 0x179   : > { %v814_v13 = vpop.permute.xlu0 %813 }
 0x17a   : > { %816 = vxpose.xlu1.c.b16.start.end [1/1] (short) (narrow) %v814_v13, 32 }
 0x187   : > { %v726_v14 = vpop.trf.xlu0 }
 0x188   : > { %v1925_v15 = vcombine.low %v726_v14, %v726_v14  ;;  %v1926_v17 = vcombine.high %v726_v14, %v726_v14 }
 0x18a   : > { %748 = vxpose.xlu1.c.b16.start.end [1/1] (short) (narrow) %v1925_v15, 16 }
 0x18b   : > { %v727_v16 = vpop.trf.xlu0 }
 0x18c   : > { %v1927_v18 = vcombine.low %v727_v16, %v727_v16  ;;  %v1928_v19 = vcombine.high %v727_v16, %v727_v16 }
 0x18e   : > { %764 = vxpose.xlu1.c.b16.start.end [1/1] (short) (narrow) %v1926_v17, 16 }
 0x192   : > { %780 = vxpose.xlu1.c.b16.start.end [1/1] (short) (narrow) %v1927_v18, 16 }
 0x196   : > { %796 = vxpose.xlu1.c.b16.start.end [1/1] (short) (narrow) %v1928_v19, 16 }
 0x1dc   : > { %v824_v20 = vpop.trf.xlu1 }
 0x1dd   : > { %v1929_v21 = vcombine.low %v824_v20, %v824_v20  ;;  %v1930_v26 = vcombine.high %v824_v20, %v824_v20 }
 0x1df   : > { %v877_v22 = vsel %vm875_vm3, %v1929_v21, 0  ;;  %v923_v28 = vsel %vm875_vm3, %v1930_v26, 0 }
 0x1e0   : > { %2019 = vmatpush3.bf16.msra.mxu1 %v877_v22  ;;  %v825_v23 = vpop.trf.xlu1 }
 0x1e1   : > { %v1931_v24 = vcombine.low %v825_v23, %v825_v23  ;;  %2024 = vmatprep.subr.bf16.mxu1 %v2308_v2  ;;  %v1932_v30 = vcombine.high %v825_v23, %v825_v23 }
 0x1e3   : > { %v969_v25 = vsel %vm875_vm3, %v1931_v24, 0  ;;  %v1015_v32 = vsel %vm875_vm3, %v1932_v30, 0 }
 0x1e4   : > { %2031 = vmatpush3.bf16.msra.mxu0 %v969_v25 }
 0x1e5   : > { %2042 = vmatprep.subr.bf16.mxu0 %v2308_v2 }
 0x1ec   : > { %v756_v27 = vpop.trf.xlu1 }
 0x1ed   : > { %2021 = vmatmul.mubr.msk.bf16.vlgmr.msra.gmra.mxu1 %vm871_vm4, %v756_v27 }
 0x1ee   : > { %2025 = vmatpush3.bf16.msra.mxu1 %v923_v28  ;;  %2026 = vmatprep.mubr.msk.bf16.mxu1 %vm2309_vm1, %v2308_v2 }
 0x1ef   : > { %2036 = vmatprep.subr.bf16.mxu1 %v2308_v2 }
 0x1f0   : > { %v772_v29 = vpop.trf.xlu1 }
 0x1f4   : > { %v788_v31 = vpop.trf.xlu1 }
 0x1f5   : > { %2027 = vmatmul.mubr.msk.bf16.vlgmr.msra.gmra.mxu1 %vm871_vm4, %v772_v29  ;;  %2033 = vmatmul.mubr.msk.bf16.vlgmr.msra.gmra.mxu0 %vm871_vm4, %v788_v31 }
 0x1f6   : > { %2037 = vmatpush3.bf16.msra.mxu1 %v1015_v32  ;;  %2038 = vmatprep.mubr.msk.bf16.mxu1 %vm2309_vm1, %v2308_v2 }
 0x1f7   : > { %2048 = vmatprep.subr.bf16.mxu1 %v2308_v2  ;;  %2044 = vmatprep.mubr.msk.bf16.mxu0 %vm2309_vm1, %v2308_v2 }
 0x1f8   : > { %v804_v33 = vpop.trf.xlu1 }
 0x1fd   : > { %2039 = vmatmul.mubr.msk.bf16.vlgmr.msra.gmra.mxu1 %vm871_vm4, %v804_v33 }
 0x1fe   : > { %2050 = vmatprep.mubr.msk.bf16.mxu1 %vm2309_vm1, %v2308_v2 }
 0x2ad   : > { %v913_v34 = vpop.f32.mrf.mxu1 }
 0x2ae   : > { %v1057_v35 = vsel %vm871_vm4, %v913_v34, -inf }
 0x2af   : > { %1058 = vmax.xlane.f32.xlu1 %v1057_v35  ;;  %v2022_v36 = vpop.f32.mrf.mxu1 }
 0x2b1   : > { %v916_v37 = vpop.f32.mrf.mxu1 }
 0x2b3   : > { %v2023_v38 = vpop.f32.mrf.mxu1 }
 0x2b5   : > { %v959_v39 = vpop.f32.mrf.mxu1  ;;  %v1005_v40 = vpop.f32.mrf.mxu0 }
 0x2b6   : > { %v1063_v41 = vsel %vm871_vm4, %v1005_v40, -inf  ;;  %v1060_v42 = vsel %vm871_vm4, %v959_v39, -inf }
 0x2b7   : > { %v2034_v43 = vpop.f32.mrf.mxu0  ;;  %1064 = vmax.xlane.f32.xlu1 %v1063_v41  ;;  %1061 = vmax.xlane.f32.xlu0 %v1060_v42  ;;  %v2028_v44 = vpop.f32.mrf.mxu1 }
 0x2b9   : > { %v962_v45 = vpop.f32.mrf.mxu1  ;;  %v1008_v46 = vpop.f32.mrf.mxu0 }
 0x2bb   : > { %v2029_v47 = vpop.f32.mrf.mxu1  ;;  %v2035_v48 = vpop.f32.mrf.mxu0 }
 0x2bd   : > { %v1051_v49 = vpop.f32.mrf.mxu1 }
 0x2be   : > { %v1066_v50 = vsel %vm871_vm4, %v1051_v49, -inf }
 0x2bf   : > { %1067 = vmax.xlane.f32.xlu1 %v1066_v50  ;;  %v2040_v51 = vpop.f32.mrf.mxu1 }
 0x2c1   : > { %v1054_v52 = vpop.f32.mrf.mxu1 }
 0x2c3   : > { %v2041_v53 = vpop.f32.mrf.mxu1 }
 0x2d0   : > { %842 = vrot.lane.b32.xlu1 %v2541_v10, %s2311_s24 }
 0x338   : > { %v1059_v54 = vpop.xlane.xlu1 %1058 }
 0x339   : > { %v1069_v55 = vsub.f32 %v913_v34, %v1059_v54 }
 0x33b   : > { %v1073_v56 = vmul.f32 1.442695, %v1069_v55 }
 0x33d   : > { %2192 = vpow2.f32 %v1073_v56 }
 0x340   : > { %v1065_v57 = vpop.xlane.xlu1 %1064  ;;  %v1062_v58 = vpop.xlane.xlu0 %1061 }
 0x341   : > { %v1071_v59 = vsub.f32 %v1005_v40, %v1065_v57  ;;  %v1070_v60 = vsub.f32 %v959_v39, %v1062_v58  ;;  %v2180_v39 = vld [vmem:[%s2475_s29 + $0x8] sm:$0xff]   ;;  %v2181_v40 = vld [vmem:[%s2475_s29] sm:$0xff]  }
 0x343   : > { %v1077_v61 = vmul.f32 1.442695, %v1071_v59  ;;  %v1075_v62 = vmul.f32 1.442695, %v1070_v60 }
 0x345   : > { %2194 = vpow2.f32 %v1077_v61 }
 0x346   : > { %2196 = vpow2.f32 %v1075_v62 }
 0x348   : > { %v1068_v63 = vpop.xlane.xlu1 %1067 }
 0x349   : > { %v1072_v0 = vsub.f32 %v1051_v49, %v1068_v63 }
 0x34a   : > { %v2193_v1 = vpop.eup %2192 }
 0x34b   : > { %v1079_v3 = vmul.f32 1.442695, %v1072_v0  ;;  %v1081_v5 = vsel %vm871_vm4, %v2193_v1, 0.0 }
 0x34c   : > { %1082 = vadd.xlane.f32.xlu0 %v1081_v5  ;;  %v843_v12 = vpop.permute.xlu1 %842 }
 0x34d   : > { %2198 = vpow2.f32 %v1079_v3 }
 0x352   : > { %v2195_v6 = vpop.eup %2194 }
 0x353   : > { %v1087_v7 = vsel %vm871_vm4, %v2195_v6, 0.0  ;;  %v2197_v8 = vpop.eup %2196 }
 0x354   : > { %1088 = vadd.xlane.f32.xlu0 %v1087_v7  ;;  %v1084_v9 = vsel %vm871_vm4, %v2197_v8, 0.0 }
 0x358   : > { %1085 = vadd.xlane.f32.xlu0 %v1084_v9 }
 0x35a   : > { %v2199_v10 = vpop.eup %2198 }
 0x35b   : > { %v1090_v11 = vsel %vm871_vm4, %v2199_v10, 0.0 }
 0x35c   : > { %1091 = vadd.xlane.f32.xlu1 %v1090_v11 }
 0x385   : > { %845 = vxpose.xlu0.c.b16.start.end [1/1] (short) (narrow) %v843_v12, 32 }
 0x3d5   : > { %v1083_v13 = vpop.xlane.xlu0 %1082 }
 0x3d6   : > { %2200 = vrcp.f32 %v1083_v13 }
 0x3dd   : > { %v1089_v14 = vpop.xlane.xlu0 %1088 }
 0x3e1   : > { %v1086_v15 = vpop.xlane.xlu0 %1085 }
 0x3e2   : > { %2202 = vrcp.f32 %v1086_v15 }
 0x3e3   : > { %2204 = vrcp.f32 %v1089_v14  ;;  %v2201_v20 = vpop.eup %2200 }
 0x3e4   : > { %v1097_v25 = vmul.f32 %v2201_v20, %v2193_v1  ;;  %v2183_v20 = vld [vmem:[%s2492_s15] sm:$0xff]  }
 0x3e5   : > { %v1092_v16 = vpop.xlane.xlu1 %1091 }
 0x3e6   : > { %2206 = vrcp.f32 %v1092_v16  ;;  %v1101_v28 = vpack.c.bf16 %v1097_v25, %v1097_v25 }
 0x3e7   : > { %v853_v17 = vpop.trf.xlu0 }
 0x3e8   : > { %v1933_v18 = vcombine.low %v853_v17, %v853_v17  ;;  %v1934_v19 = vcombine.high %v853_v17, %v853_v17 }
 0x3ea   : > { %v1109_v21 = vsel %vm871_vm4, %v1933_v18, 0  ;;  %v1155_v22 = vsel %vm871_vm4, %v1934_v19, 0  ;;  %v2182_v19 = vld [vmem:[%s2492_s15 + $0x8] sm:$0xff]   ;;  %s2768_s15 = scalar_lea.vmem %s2715_s6, %s2459_s30  ;;  %s2312_s30 = smov [#allocation2]  }
 0x3eb   : > { %2043 = vmatpush3.bf16.xpose.msra.mxu0 %v1109_v21  ;;  %2049 = vmatpush3.bf16.xpose.msra.mxu1 %v1155_v22  ;;  %v854_v23 = vpop.trf.xlu0 }
 0x3ec   : > { %v1935_v24 = vcombine.low %v854_v23, %v854_v23  ;;  %2054 = vmatprep.subr.bf16.mxu0 %v2308_v2  ;;  %2060 = vmatprep.subr.bf16.mxu1 %v2308_v2  ;;  %v1936_v26 = vcombine.high %v854_v23, %v854_v23 }
 0x3ee   : > { %v1201_v29 = vsel %vm871_vm4, %v1935_v24, 0  ;;  %v1247_v33 = vsel %vm871_vm4, %v1936_v26, 0  ;;  %v1951_v24 = vld [vmem:[%s2767_s0] ss:$0 sm:$0xff] }
 0x3ef   : > { %v2203_v27 = vpop.eup %2202  ;;  %v1952_v26 = vld [vmem:[%s2768_s15] ss:$0 sm:$0xff] }
 0x3f0   : > { %v1098_v30 = vmul.f32 %v2203_v27, %v2197_v8  ;;  %v2205_v31 = vpop.eup %2204 }
 0x3f1   : > { %v1099_v35 = vmul.f32 %v2205_v31, %v2195_v6  ;;  %v1947_v6 = vld [vmem:[%s2766_s18] ss:$0 sm:$0xff]  ;;  %v2185_v31 = vld [vmem:[%s2506_s23 + $0x30] sm:$0xff]   ;;  %s1969_s18 = sshll.u32 %s2769_s3, 7 }
 0x3f2   : > { %2045 = vmatmul.mubr.msk.bf16.vlgmr.msra.gmra.mxu0 %vm871_vm4, %v1101_v28  ;;  %v1102_v32 = vpack.c.bf16 %v1098_v30, %v1098_v30  ;;  %v2184_v30 = vld [vmem:[%s2506_s23 + $0x38] sm:$0xff]   ;;  %s1713_s15 = scalar_lea.hbm %s2773_s27, %s1969_s18 }
 0x3f3   : > { %v2207_v34 = vpop.eup %2206  ;;  %2055 = vmatpush3.bf16.xpose.msra.mxu0 %v1201_v29  ;;  %2056 = vmatprep.mubr.msk.bf16.mxu0 %vm2309_vm1, %v2308_v2  ;;  %v1103_v37 = vpack.c.bf16 %v1099_v35, %v1099_v35  ;;  %v2189_v35 = vld [vmem:[%s2506_s23 + $0x10] sm:$0xff]  }
 0x3f4   : > { %2051 = vmatmul.mubr.msk.bf16.vlgmr.msra.gmra.mxu1 %vm871_vm4, %v1102_v32  ;;  %2066 = vmatprep.subr.bf16.mxu0 %v2308_v2  ;;  %v1100_v36 = vmul.f32 %v2207_v34, %v2199_v10  ;;  %v2186_v32 = vld [vmem:[%s2506_s23 + $0x28] sm:$0xff]   ;;  %v2188_v34 = vld [vmem:[%s2506_s23 + $0x18] sm:$0xff]  }
 0x3f5   : > { %2061 = vmatpush3.bf16.xpose.msra.mxu1 %v1247_v33  ;;  %2062 = vmatprep.mubr.msk.bf16.mxu1 %vm2309_vm1, %v2308_v2  ;;  %v2187_v33 = vld [vmem:[%s2506_s23 + $0x20] sm:$0xff]  }
 0x3f6   : > { %2074 = vmatprep.subr.bf16.mxu1 %v2308_v2  ;;  %v1104_v38 = vpack.c.bf16 %v1100_v36, %v1100_v36  ;;  %v2190_v36 = vld [vmem:[%s2506_s23 + $0x8] sm:$0xff]  }
 0x3fa   : > { %2057 = vmatmul.mubr.msk.bf16.vlgmr.msra.gmra.mxu0 %vm871_vm4, %v1103_v37  ;;  %v2191_v37 = vld [vmem:[%s2506_s23] sm:$0xff]  }
 0x3fb   : > { %2070 = vmatprep.mubr.msk.bf16.mxu0 %vm2309_vm1, %v2308_v2  ;;  %2067 = vmatpush3.bf16.msra.mxu0 %v2180_v39 }
 0x3fc   : > { %2063 = vmatmul.mubr.msk.bf16.vlgmr.msra.gmra.mxu1 %vm871_vm4, %v1104_v38  ;;  %2068 = vmatprep.subr.bf16.mxu0 %v2308_v2  ;;  %v1953_v38 = vld [vmem:[%s625_s13] ss:$0 sm:$0xff] }
 0x3fd   : > { %2078 = vmatprep.mubr.msk.bf16.mxu1 %vm2309_vm1, %v2308_v2  ;;  %2075 = vmatpush3.bf16.msra.mxu1 %v2182_v19 }
 0x3fe   : > { %2076 = vmatprep.subr.bf16.mxu1 %v2308_v2 }
 0x3ff   : > { %2069 = vmatpush3.bf16.msra.mxu0 %v2181_v40 }
 0x400   : > { %2082 = vmatprep.subr.bf16.mxu0 %v2308_v2 }
 0x401   : > { %2077 = vmatpush3.bf16.msra.mxu1 %v2183_v20 }
 0x4b2   : > { %v1145_v41 = vpop.f32.mrf.mxu0 }
 0x4b3   : > { %v1289_v42 = vpack.c.bf16 %v1145_v41, %v1145_v41 }
 0x4b4   : > { %v2046_v43 = vpop.f32.mrf.mxu0  ;;  %v1191_v44 = vpop.f32.mrf.mxu1 }
 0x4b5   : > { %v1290_v45 = vpack.c.bf16 %v1191_v44, %v1191_v44  ;;  %1293 = vxpose.xlu1.c.b16.start.end [1/1] (short) (narrow) %v1289_v42, 16 }
 0x4b6   : > { %v1148_v46 = vpop.f32.mrf.mxu0  ;;  %v2052_v47 = vpop.f32.mrf.mxu1 }
 0x4b7   : > { %1309 = vxpose.xlu0.c.b16.start.end [1/1] (short) (narrow) %v1290_v45, 16 }
 0x4b8   : > { %v2047_v48 = vpop.f32.mrf.mxu0  ;;  %v1194_v49 = vpop.f32.mrf.mxu1 }
 0x4ba   : > { %v2053_v50 = vpop.f32.mrf.mxu1  ;;  %v1237_v51 = vpop.f32.mrf.mxu0 }
 0x4bb   : > { %v1291_v52 = vpack.c.bf16 %v1237_v51, %v1237_v51 }
 0x4bc   : > { %v2058_v53 = vpop.f32.mrf.mxu0  ;;  %v1283_v54 = vpop.f32.mrf.mxu1 }
 0x4bd   : > { %1325 = vxpose.xlu0.c.b16.start.end [1/1] (short) (narrow) %v1291_v52, 16  ;;  %v1292_v57 = vpack.c.bf16 %v1283_v54, %v1283_v54  ;;  %v1957_v53 = vld [vmem:[%s633_s12] ss:$0 sm:$0xff]  ;;  %s2770_s12 = sld [smem:[#allocation6_spill]] }
 0x4be   : > { %v1240_v55 = vpop.f32.mrf.mxu0  ;;  %v2064_v56 = vpop.f32.mrf.mxu1 }
 0x4c0   : > { %v2059_v58 = vpop.f32.mrf.mxu0  ;;  %v1286_v59 = vpop.f32.mrf.mxu1 }
 0x4c1   : > { %1341 = vxpose.xlu0.c.b16.start.end [1/1] (short) (narrow) %v1292_v57, 16 }
 0x4c2   : > { %v2065_v60 = vpop.f32.mrf.mxu1 }
 0x4c3   : > { %s2775_s25 = sand.u32 1, %s2770_s12  }
 0x4c4   : > { %s1702_s20 = scalar_lea.sflag [#allocation3], %s2775_s25 }
 0x517   : > { %v1301_v61 = vpop.trf.xlu1 }
 0x519   : > { %v1317_v62 = vpop.trf.xlu0 }
 0x51a   : > { %v1945_v63 = vcombine.low %v1301_v61, %v1317_v62 }
 0x51c   : > { %1369 = vxpose.xlu0.c.b16.start [1/2] (short) (narrow) %v1945_v63, 16 }
 0x51f   : > { %v1333_v0 = vpop.trf.xlu0 }
 0x523   : > { %v1349_v1 = vpop.trf.xlu0 }
 0x524   : > { %v1946_v3 = vcombine.low %v1333_v0, %v1349_v1 }
 0x526   : > { %1370 = vxpose.xlu0.c.b16.end [2/2] (short) (narrow) %v1946_v3, 16 }
 0x584   : > { %v1377_v5 = vpop.trf.xlu0 }
 0x585   : > { %2071 = vmatmul.mubr.msk.bf16.vlgmr.msra.gmra.mxu0 %vm673_vm2, %v1377_v5 }
 0x586   : > { %2098 = vmatprep.mubr.msk.bf16.mxu0 %vm2309_vm1, %v2308_v2  ;;  %2083 = vmatpush3.bf16.msra.mxu0 %v2184_v30 }
 0x587   : > { %2084 = vmatprep.subr.bf16.mxu0 %v2308_v2 }
 0x58a   : > { %2085 = vmatpush3.bf16.msra.mxu0 %v2185_v31 }
 0x58b   : > { %2086 = vmatprep.subr.bf16.mxu0 %v2308_v2 }
 0x58e   : > { %2087 = vmatpush3.bf16.msra.mxu0 %v2186_v32 }
 0x58f   : > { %2088 = vmatprep.subr.bf16.mxu0 %v2308_v2 }
 0x592   : > { %2089 = vmatpush3.bf16.msra.mxu0 %v2187_v33 }
 0x593   : > { %2090 = vmatprep.subr.bf16.mxu0 %v2308_v2 }
 0x596   : > { %2091 = vmatpush3.bf16.msra.mxu0 %v2188_v34 }
 0x597   : > { %2092 = vmatprep.subr.bf16.mxu0 %v2308_v2 }
 0x59a   : > { %2093 = vmatpush3.bf16.msra.mxu0 %v2189_v35 }
 0x59b   : > { %2094 = vmatprep.subr.bf16.mxu0 %v2308_v2 }
 0x59e   : > { %2095 = vmatpush3.bf16.msra.mxu0 %v2190_v36 }
 0x59f   : > { %2096 = vmatprep.subr.bf16.mxu0 %v2308_v2 }
 0x5a2   : > { %2097 = vmatpush3.bf16.msra.mxu0 %v2191_v37 }
 0x645   : > { %v1445_v7 = vpop.f32.mrf.mxu0 }
 0x646   : > { %v1446_v8 = vadd.f32 %v1947_v6, %v1445_v7 }
 0x647   : > { %v2072_v9 = vpop.f32.mrf.mxu0 }
 0x648   : > { %v1451_v10 = vadd.f32 %v1446_v8, %v2525_v4  ;;  %v1966_v8 = vld [vmem:[%s636_s1] ss:$0 sm:$0xff]  ;;  %s2214_s1 = scalar_lea.vmem %s1716_s19, 128 }
 0x649   : > { %v1448_v11 = vpop.f32.mrf.mxu0  ;;  %p2215_p1 = scmp.ne.s32.totalorder %s1716_s19, %s2214_s1 }
 0x64a   : > { %v1454_v12 = vsel %vm673_vm2, %v1451_v10, 0.0 }
 0x64b   : > { %1455 = vadd.xlane.f32.xlu0 %v1454_v12  ;;  %v2073_v13 = vpop.f32.mrf.mxu0  ;;  %p2216_p2 = pnand %p2215_p1, %p2432_p3 }
 0x64d   : > { %p2217_p4 = pneg %p2216_p2 }
 0x6d4   : > { %v1456_v14 = vpop.xlane.xlu0 %1455 }
 0x6d5   : > { %v1458_v15 = vmul.f32 0.03125, %v1456_v14 }
 0x6d7   : > { %v1459_v16 = vsub.f32 %v1451_v10, %v1458_v15  ;;  %v1967_v10 = vld [vmem:[%s639_s7] ss:$0 sm:$0xff]  ;;  %s2218_s7 = sshll.u32 %s2312_s30, 4  ;;  %s2219_s7 = int_to_ptr.vmem [resolvable:$false] %s2218_s7 }
 0x6d8   : > { %s2220_s23 = scalar_lea.vmem %s2219_s7, 256  ;;  %p2221_p5 = scmp.lt.s32.totalorder %s1716_s19, %s2219_s7 }
 0x6d9   : > { %v1460_v17 = vmul.f32 %v1459_v16, %v1459_v16  ;;  %p2222_p6 = scmp.lt.s32.totalorder %s2220_s23, %s2214_s1 }
 0x6db   : > { %v1461_v18 = vsel %vm673_vm2, %v1460_v17, 0.0  ;;  %p2223_p7 = por %p2222_p6, %p2221_p5 }
 0x6dc   : > { %1462 = vadd.xlane.f32.xlu1 %v1461_v18 }
 0x6dd   : > { %p2224_p8 = pnand %p2223_p7, %p2217_p4 }
 0x765   : > { %v1463_v4 = vpop.xlane.xlu1 %1462 }
 0x766   : > { %v1464_v21 = vmul.f32 0.03125, %v1463_v4 }
 0x768   : > { %v1465_v22 = vadd.f32 1e-05, %v1464_v21 }
 0x76a   : > { %2208 = vrsqrt.f32 %v1465_v22 }
 0x777   : > { %v2209_v23 = vpop.eup %2208 }
 0x778   : > { %v1467_v25 = vmul.f32 %v2209_v23, %v1459_v16 }
 0x77a   : > { %v1474_v27 = vmul.f32 %v1951_v24, %v1467_v25 }
 0x77c   : > { %v1481_v28 = vadd.f32 %v1952_v26, %v1474_v27 }
 0x77e   : > { %v1482_v29 = vpack.c.bf16 %v1481_v28, %v1481_v28 }
 0x780   : > { %2079 = vmatmul.mubr.msk.bf16.vlgmr.msra.gmra.mxu1 %vm673_vm2, %v1482_v29 }
 0x840   : > { %v1543_v39 = vpop.f32.mrf.mxu1 }
 0x841   : > { %v1544_v40 = vadd.f32 %v1953_v38, %v1543_v39 }
 0x842   : > { %v2080_v41 = vpop.f32.mrf.mxu1 }
 0x843   : > { %v1549_v42 = vmul.f32 %v1544_v40, %v1544_v40 }
 0x844   : > { %v1546_v43 = vpop.f32.mrf.mxu1 }
 0x845   : > { %v1550_v44 = vmul.f32 %v1549_v42, %v1544_v40 }
 0x846   : > { %v2081_v45 = vpop.f32.mrf.mxu1 }
 0x847   : > { %v1551_v46 = vmul.f32 0.044715, %v1550_v44 }
 0x849   : > { %v1552_v47 = vadd.f32 %v1551_v46, %v1544_v40 }
 0x84b   : > { %v1553_v48 = vmul.f32 0.7978846, %v1552_v47 }
 0x84d   : > { %2210 = vtanh.f32 %v1553_v48 }
 0x85a   : > { %v2211_v49 = vpop.eup %2210 }
 0x85b   : > { %v1555_v2 = vadd.f32 1.0, %v2211_v49 }
 0x85d   : > { %v1556_v50 = vmul.f32 0.5, %v1555_v2 }
 0x85f   : > { %v1557_v51 = vmul.f32 %v1556_v50, %v1544_v40 }
 0x861   : > { %v1558_v52 = vpack.c.bf16 %v1557_v51, %v1557_v51 }
 0x863   : > { %2099 = vmatmul.mubr.bf16.vlgmr.msra.gmra.mxu0 %v1558_v52 }
 0x923   : > { %v1664_v54 = vpop.f32.mrf.mxu0 }
 0x924   : > { %v1665_v55 = vadd.f32 %v1957_v53, %v1664_v54 }
 0x925   : > { %v2100_v56 = vpop.f32.mrf.mxu0 }
 0x926   : > { %v1670_v57 = vadd.f32 %v1665_v55, %v1481_v28 }
 0x927   : > { %v1667_v58 = vpop.f32.mrf.mxu0 }
 0x928   : > { %v1673_v59 = vsel %vm673_vm2, %v1670_v57, 0.0 }
 0x929   : > { %1674 = vadd.xlane.f32.xlu0 %v1673_v59  ;;  %v2101_v60 = vpop.f32.mrf.mxu0 }
 0x9b2   : > { %v1675_v61 = vpop.xlane.xlu0 %1674 }
 0x9b3   : > { %v1676_v62 = vmul.f32 0.03125, %v1675_v61 }
 0x9b5   : > { %v1677_v63 = vsub.f32 %v1670_v57, %v1676_v62 }
 0x9b7   : > { %v1678_v0 = vmul.f32 %v1677_v63, %v1677_v63 }
 0x9b9   : > { %v1679_v1 = vsel %vm673_vm2, %v1678_v0, 0.0 }
 0x9ba   : > { %1680 = vadd.xlane.f32.xlu0 %v1679_v1 }
 0xa43   : > { %v1681_v3 = vpop.xlane.xlu0 %1680 }
 0xa44   : > { %v1682_v5 = vmul.f32 0.03125, %v1681_v3 }
 0xa46   : > { %v1683_v6 = vadd.f32 1e-05, %v1682_v5 }
 0xa48   : > { %2212 = vrsqrt.f32 %v1683_v6 }
 0xa55   : > { %v2213_v7 = vpop.eup %2212 }
 0xa56   : > { %v1685_v9 = vmul.f32 %v2213_v7, %v1677_v63 }
 0xa58   : > { %v1692_v11 = vmul.f32 %v1966_v8, %v1685_v9 }
 0xa5a   : > { %v1699_v12 = vadd.f32 %v1967_v10, %v1692_v11 }
 0xa5c   : > { %1700 = vst.msk [vmem:[%s2516_s26] sm:$0xff] %vm673_vm2, %v1699_v12 }
 0xa5d   : > { %2227 = shalt.err (!%p2224_p8)
}
 0xa5e   : > { %s2228_s13 = scalar_lea.hbm %s1713_s15, 128  ;;  %s2232_s12 = scalar_lea.hbm %s2774_s16, 256 }
 0xa5f   : > { %p2229_p10 = scmp.ne.s32.totalorder %s1713_s15, %s2228_s13  ;;  %p2233_p13 = scmp.lt.s32.totalorder %s1713_s15, %s2774_s16 }
 0xa60   : > { %p2234_p0 = scmp.lt.s32.totalorder %s2232_s12, %s2228_s13 }
 0xa61   : > { %p2230_p11 = pnand %p2229_p10, %p2432_p3 }
 0xa62   : > { %p2235_p1 = por %p2234_p0, %p2233_p13 }
 0xa63   : > { %p2231_p12 = pneg %p2230_p11 }
 0xa65   : > { %p2236_p2 = pnand %p2235_p1, %p2231_p12 }
 0xa67   : > { %2239 = shalt.err (!%p2236_p2)
}
 0xa68   : > { %2102 = dma.vmem_to_hbm [thread:$0]  (%p2432_p3), %s1716_s19, 128, %s1713_s15, %s1702_s20  }
 0xa69 PF: > { %s2776_s24 = sld [smem:[#allocation12_spill]] }
 0xa6a   : > { %s2777_s29 = sld [smem:[#allocation5_spill]] }
 0xa6f   : > { %p2108_p4 = scmp.ge.s32.totalorder %s2776_s24, 2 }
 0xa70   : > { %s1727_s18 = sand.u32 1, %s2777_s29  }
 0xa71   : > { %p2105_p5 = pnand %p2108_p4, %p2442_p9  ;;  %s1728_s22 = scalar_lea.sflag [#allocation3], %s1727_s18 }
 0xa73   : > { %p2106_p6 = pneg %p2105_p5 }
 0xa75   : > { %2273 = dma.done.wait (%p2106_p6), %s1728_s22, 128  }
 0xa76   : > { %2275 = vsyncadd (%p2106_p6), %s1728_s22, 4294967168  ;;  %s26_s15 = sadd.s32 1, %s2776_s24   ;;  %s2779_s25 = sld [smem:[#allocation6_spill]] }
 0xa77   : > { %p23_p7 = scmp.ge.s32.totalorder %s26_s15, 6   ;;  %s2780_s26 = sld [smem:[#allocation7_spill]] }
 0xa78   : > { %s2781_s27 = sld [smem:[#allocation17_spill]] }
 0xa79   : > { %s2782_s28 = sld [smem:[#allocation10_spill]]  ;;  %25 = sbr.rel (!%p23_p7) target bundleno = 12 (0xc), region = 147 }
 0xa7a   : > { %s2783_s29 = sld [smem:[#allocation11_spill]] }
 0xa7b   : > { %s2784_s30 = sld [smem:[#allocation13_spill]] }
 0xa7c   : > { %s2785_s14 = sld [smem:[#allocation15_spill]] }
 0xa7e   :  { %1733 = vsyncpa [#allocation3], 1 }
 0xa7f   :  { %1735 = vsyncpa [#allocation3 + $0x1], 1 }

</bundles_post_ra>
